<compile_context>
chip_gen: v6e
topology: v6e:2x2x1
jax: 0.10.0
libtpu: 0.0.40
codegen_flags: <defaults>
</compile_context>

<pallas_src>
import functools

import jax
import jax.numpy as jnp
from jax.experimental import pallas as pl
from jax.experimental.pallas import tpu as pltpu

_TARGET_BLOCK_BYTES = 1 << 20   # ~1 MiB per input block (f32 accounting)
_MAX_ROWS = 256                 # max sublane rows per block (multiple of 8)
_MAX_LANES = 8192               # caps in-kernel unroll (lanes // 128 chunks)
_MIN_LANES = 512                # keep each strided DMA row >= 2 KiB contiguous


def _choose_block(nc, hw):
    """Pick (rows, lanes) for a (nc, hw) operand, targeting ~1 MiB f32 blocks."""
    if nc <= 8:
        rows = nc                                   # full extent (always legal)
    else:
        rows = (min(nc, _MAX_ROWS) // 8) * 8        # multiple of 8
        if nc >= 16 and pl.cdiv(nc, rows) < 2:
            # Give v7x's second TensorCore a row block to work on.
            rows = max(8, ((pl.cdiv(nc, 2) + 7) // 8) * 8)

    if hw * rows * 4 <= _TARGET_BLOCK_BYTES:
        lanes = hw                                  # single spatial step
    else:
        budget = (_TARGET_BLOCK_BYTES // (rows * 4)) // 128 * 128
        lanes = max(_MIN_LANES, min((hw // 128) * 128, budget, _MAX_LANES))
    return rows, lanes


def _sqdiff_mean_single_kernel(a_ref, b_ref, o_ref, *, inv_hw):
    """Whole spatial extent in one block: mean_{HW}((a-b)^2) per row."""
    d = a_ref[...].astype(jnp.float32) - b_ref[...].astype(jnp.float32)
    o_ref[...] = jnp.sum(d * d, axis=1, keepdims=True) * jnp.float32(inv_hw)


def _sqdiff_mean_tiled_kernel(a_ref, b_ref, o_ref, acc_ref, *, hw, lanes, inv_hw):
    """Spatially-tiled reduction with a lane-dense (rows, 128) accumulator."""
    t = pl.program_id(1)
    last = pl.num_programs(1) - 1

    @pl.when(t == 0)
    def _():
        acc_ref[...] = jnp.zeros_like(acc_ref)

    def partial_sums(valid):
        # Accumulate (a-b)^2 over the first `valid` lanes of this tile into the
        # lane-dense running sum, one aligned 128-lane chunk at a time.  Pure
        # VALU work each step; the cross-lane reduce is deferred to the end.
        acc = acc_ref[...]
        for k in range((valid + 127) // 128):
            sl = pl.ds(k * 128, 128)
            d = a_ref[:, sl].astype(jnp.float32) - b_ref[:, sl].astype(jnp.float32)
            sq = d * d
            chunk_valid = valid - k * 128
            if chunk_valid < 128:  # only the boundary chunk of the last tile
                lane = jax.lax.broadcasted_iota(jnp.int32, sq.shape, 1)
                sq = jnp.where(lane < chunk_valid, sq, 0.0)
            acc = acc + sq
        acc_ref[...] = acc

    rem = hw % lanes
    if rem == 0:
        partial_sums(lanes)
    else:
        # Mask only the (single) partial last tile; every other step takes the
        # cheap unmasked path.
        @pl.when(t < last)
        def _():
            partial_sums(lanes)

        @pl.when(t == last)
        def _():
            partial_sums(rem)

    @pl.when(t == last)
    def _():
        o_ref[...] = (jnp.sum(acc_ref[...], axis=1, keepdims=True)
                      * jnp.float32(inv_hw))


def sqdiff_spatial_mean(a, b):
    """mean over (H, W) of (a - b)^2.  a, b: (N, C, H, W).  Returns (N*C,) f32."""
    assert a.shape == b.shape
    N, C, H, W = a.shape
    nc, hw = N * C, H * W

    # Free contiguous views: rows = N*C on sublanes, reduced extent on lanes.
    a2 = a.reshape(nc, hw)
    b2 = b.reshape(nc, hw)

    rows, lanes = _choose_block(nc, hw)
    row_blocks = pl.cdiv(nc, rows)
    inv_hw = 1.0 / hw

    cost = pl.CostEstimate(
        flops=3 * nc * hw,
        transcendentals=0,
        bytes_accessed=2 * nc * hw * a.dtype.itemsize + nc * 4,
    )

    if lanes == hw:
        # Single spatial step per row block: no mask, no accumulator carry.
        params = pltpu.CompilerParams(
            dimension_semantics=("parallel",),
            vmem_limit_bytes=32 * 1024 * 1024,
        )
        out = pl.pallas_call(
            functools.partial(_sqdiff_mean_single_kernel, inv_hw=inv_hw),
            out_shape=jax.ShapeDtypeStruct((nc, 1), jnp.float32),
            grid=(row_blocks,),
            in_specs=[
                pl.BlockSpec((rows, hw), lambda i: (i, 0)),
                pl.BlockSpec((rows, hw), lambda i: (i, 0)),
            ],
            out_specs=pl.BlockSpec((rows, 1), lambda i: (i, 0)),
            compiler_params=params,
            cost_estimate=cost,
        )(a2, b2)
    else:
        spatial_blocks = pl.cdiv(hw, lanes)
        params = pltpu.CompilerParams(
            dimension_semantics=("parallel", "arbitrary"),
            vmem_limit_bytes=32 * 1024 * 1024,
        )
        out = pl.pallas_call(
            functools.partial(_sqdiff_mean_tiled_kernel,
                              hw=hw, lanes=lanes, inv_hw=inv_hw),
            out_shape=jax.ShapeDtypeStruct((nc, 1), jnp.float32),
            grid=(row_blocks, spatial_blocks),
            in_specs=[
                pl.BlockSpec((rows, lanes), lambda i, t: (i, t)),
                pl.BlockSpec((rows, lanes), lambda i, t: (i, t)),
            ],
            out_specs=pl.BlockSpec((rows, 1), lambda i, t: (i, 0)),
            scratch_shapes=[pltpu.VMEM((rows, 128), jnp.float32)],
            compiler_params=params,
            cost_estimate=cost,
        )(a2, b2)

    return out.reshape(-1)  # row index is n*C + c -> matches PyTorch .reshape(-1)


def lpips_metric(img1, img2):
    """img1, img2: sequences of 5 feature tensors, each (N, C, H_i, W_i)."""
    assert len(img1) == len(img2) == 5
    res_sum = None
    for a, b in zip(img1, img2):
        r = sqdiff_spatial_mean(a, b)
        res_sum = r if res_sum is None else res_sum + r  # tiny (N*C,) adds; XLA fuses
    return res_sum


if __name__ == "__main__":
    key = jax.random.PRNGKey(0)
    N, C = 2, 4
    spatial = [16, 16, 8, 8, 4]  # per-level spatial sizes (N*C identical across levels)

    img1, img2 = [], []
    for s in spatial:
        k1, k2, key = jax.random.split(key, 3)
        img1.append(jax.random.normal(k1, (N, C, s, s), dtype=jnp.float32))
        img2.append(jax.random.normal(k2, (N, C, s, s), dtype=jnp.float32))

    out = jax.block_until_ready(lpips_metric(img1, img2))

    # Pure-JAX reference (same math as the PyTorch module).
    ref = 0.0
    for a, b in zip(img1, img2):
        ref = ref + ((a - b) ** 2).mean(axis=(2, 3)).reshape(-1)

    assert out.shape == (N * C,)
    assert out.dtype == jnp.float32
    assert jnp.allclose(out, ref, rtol=1e-4, atol=1e-6)

    # Also exercise the spatially-tiled reduction path (large H*W levels),
    # covering both the masked-last-tile and evenly-divisible variants.
    for (h, w) in [(160, 224), (256, 256)]:
        k1, k2, key = jax.random.split(key, 3)
        xa = jax.random.normal(k1, (N, C, h, w), dtype=jnp.float32)
        xb = jax.random.normal(k2, (N, C, h, w), dtype=jnp.float32)
        got = jax.block_until_ready(sqdiff_spatial_mean(xa, xb))
        want = ((xa - xb) ** 2).mean(axis=(2, 3)).reshape(-1)
        assert jnp.allclose(got, want, rtol=1e-4, atol=1e-6)

    print("KERNEL_OK")
</pallas_src>

<mosaic_0001>
module attributes {stable_mosaic.version = 11 : i64} {
  func.func @_sqdiff_mean_single_kernel(%arg0: i32, %arg1: memref<8x256xf32, #tpu.memory_space<vmem>>, %arg2: memref<8x256xf32, #tpu.memory_space<vmem>>, %arg3: memref<8x1xf32, #tpu.memory_space<vmem>>) attributes {dimension_semantics = [#tpu.dimension_semantics<parallel>], iteration_bounds = array<i64: 1>, scalar_prefetch = 0 : i64, scratch_operands = 0 : i64, tpu.core_type = #tpu.core_type<tc>, window_params = [{transform_indices = @transform_0, window_bounds = array<i64: 8, 256>}, {transform_indices = @transform_1, window_bounds = array<i64: 8, 256>}, {transform_indices = @transform_2, window_bounds = array<i64: 8, 1>}]} {
    %c0 = arith.constant 0 : index
    %c0_0 = arith.constant 0 : index
    %0 = vector.load %arg1[%c0, %c0_0] : memref<8x256xf32, #tpu.memory_space<vmem>>, vector<8x256xf32>
    %c0_1 = arith.constant 0 : index
    %c0_2 = arith.constant 0 : index
    %1 = vector.load %arg2[%c0_1, %c0_2] : memref<8x256xf32, #tpu.memory_space<vmem>>, vector<8x256xf32>
    %2 = arith.subf %0, %1 : vector<8x256xf32>
    %3 = arith.mulf %2, %2 : vector<8x256xf32>
    %cst = arith.constant dense<0.000000e+00> : vector<8xf32>
    %4 = vector.multi_reduction <add>, %3, %cst [1] : vector<8x256xf32> to vector<8xf32>
    %5 = vector.shape_cast %4 : vector<8xf32> to vector<8x1xf32>
    %cst_3 = arith.constant 3.906250e-03 : f32
    %6 = vector.broadcast %cst_3 : f32 to vector<8x1xf32>
    %7 = arith.mulf %5, %6 : vector<8x1xf32>
    %c0_4 = arith.constant 0 : index
    %c0_5 = arith.constant 0 : index
    %8 = vector.load %arg3[%c0_4, %c0_5] : memref<8x1xf32, #tpu.memory_space<vmem>>, vector<8x1xf32>
    tpu.vector_store %arg3[%c0_4, %c0_5], %7 {strides = array<i32>} : memref<8x1xf32, #tpu.memory_space<vmem>>, vector<8x1xf32>,
    return
  }
  func.func @transform_0(%arg0: i32) -> (i32, i32) {
    %c0_i32 = arith.constant 0 : i32
    %c0_i32_0 = arith.constant 0 : i32
    return %arg0, %c0_i32 : i32, i32
  }
  func.func @transform_1(%arg0: i32) -> (i32, i32) {
    %c0_i32 = arith.constant 0 : i32
    %c0_i32_0 = arith.constant 0 : i32
    return %arg0, %c0_i32 : i32, i32
  }
  func.func @transform_2(%arg0: i32) -> (i32, i32) {
    %c0_i32 = arith.constant 0 : i32
    %c0_i32_0 = arith.constant 0 : i32
    return %arg0, %c0_i32 : i32, i32
  }
}

</mosaic_0001>

<bundles_post_ra>
// kernel: tpu_custom_call.1
= control target key start
LH: loop header
LB: loop body
LE: loop exit
PB: predicated region body
PF: predicated region fallthrough
CT: control target
= control target key end

     0   :  { %7 = vsyncpa [#allocation3], 0  ;;  %s127_s0 = inlined_call_operand.hbm [shape: f32[8,256], index: 0, kind: input, shape index: {}]   ;;  %s128_s1 = inlined_call_operand.hbm [shape: f32[8,256], index: 1, kind: input, shape index: {}]   ;;  %s129_s2 = inlined_call_operand.vmem [shape: f32[8,1], index: 2, kind: output, shape index: {}]  }
   0x1   :  { %8 = vsyncpa [#allocation5], 0  ;;  %s101_s9 = smov [#allocation2]   ;;  %s102_s11 = smov [#allocation4]  }
   0x2   :  { %s15_s10 = sshll.u32 %s101_s9, 4  ;;  %s25_s12 = sshll.u32 %s102_s11, 4  ;;  %s16_s10 = int_to_ptr.vmem [resolvable:$true] %s15_s10  ;;  %s26_s12 = int_to_ptr.vmem [resolvable:$true] %s25_s12 }
   0x3   :  { %s65_s13 = scalar_lea.vmem %s16_s10, 256  ;;  %p70_p1 = scmp.lt.s32.totalorder %s16_s10, %s16_s10 }
   0x4   :  { %p66_p0 = scmp.ne.s32.totalorder %s16_s10, %s65_s13  ;;  %p71_p2 = scmp.lt.s32.totalorder %s65_s13, %s65_s13 }
   0x6   :  { %p72_p3 = por %p71_p2, %p70_p1 }
   0x8   :  { %p73_p4 = pnand %p72_p3, %p66_p0 }
   0xa   :  { %76 = shalt.err (!%p73_p4)
}
   0xb   :  { %18 = dma.hbm_to_vmem [thread:$0]  %s127_s0, 256, %s16_s10, [#allocation3]  }
   0xc   :  { %s85_s16 = scalar_lea.vmem %s26_s12, 256  ;;  %p90_p6 = scmp.lt.s32.totalorder %s26_s12, %s26_s12 }
   0xd   :  { %p86_p5 = scmp.ne.s32.totalorder %s26_s12, %s85_s16  ;;  %p91_p7 = scmp.lt.s32.totalorder %s85_s16, %s85_s16 }
   0xf   :  { %p92_p8 = por %p91_p7, %p90_p6 }
  0x11   :  { %p93_p9 = pnand %p92_p8, %p86_p5 }
  0x13   :  { %96 = shalt.err (!%p93_p9)
}
  0x14   :  { %28 = dma.hbm_to_vmem [thread:$0]  %s128_s1, 256, %s26_s12, [#allocation5]  }
  0x15   :  { %97 = dma.done.wait [#allocation3], 256  }
  0x16   :  { %98 = vsyncadd [#allocation3], 4294967040 }
  0x17   :  { %99 = dma.done.wait [#allocation5], 256  }
  0x18   :  { %100 = vsyncadd [#allocation5], 4294967040  ;;  %v35_v0 = vld [vmem:[#allocation2] sm:$0xff]  ;;  %v36_v1 = vld [vmem:[#allocation2 + $0x8] sm:$0xff]  ;;  %vm47_vm0 = vcmask 7168  }
  0x19   :  { %v37_v2 = vld [vmem:[#allocation4] sm:$0xff]  ;;  %v38_v3 = vld [vmem:[#allocation4 + $0x8] sm:$0xff] }
  0x1a   :  { %v39_v4 = vsub.f32 %v35_v0, %v37_v2  ;;  %v40_v5 = vsub.f32 %v36_v1, %v38_v3 }
  0x1c   :  { %v41_v6 = vmul.f32 %v39_v4, %v39_v4  ;;  %v42_v7 = vmul.f32 %v40_v5, %v40_v5 }
  0x1e   :  { %v43_v8 = vadd.f32 %v42_v7, %v41_v6 }
  0x20   :  { %44 = vadd.xlane.f32.xlu0 %v43_v8 }
  0xa9   :  { %v45_v9 = vpop.xlane.xlu0 %44 }
  0xaa   :  { %v46_v10 = vmul.f32 0.00390625, %v45_v9 }
  0xac   :  { %48 = vst.msk [vmem:[%s129_s2] sm:$0xff] %vm47_vm0, %v46_v10 }
  0xad   :  { %53 = vsyncpa [#allocation3], 1 }
  0xae   :  { %54 = vsyncpa [#allocation5], 1 }

</bundles_post_ra>
